<compile_context>
chip_gen: v7x
topology: tpu7x:2x2x1
jax: 0.10.0
libtpu: 0.0.40
codegen_flags: <defaults>
</compile_context>

<pallas_src>
import functools

import jax
import jax.numpy as jnp
from jax.experimental import pallas as pl
from jax.experimental.pallas import tpu as pltpu


def _fcnn_kernel(a_ref, w_ref, x_ref, o_ref, *, const, poly_order, H, W):
    # a_ref: SMEM f32[3]              stencil coefficients
    # w_ref: SMEM f32[poly_order+1]   polynomial coefficients
    # x_ref: VMEM f32[n_tile, H*W]    flattened images (row-major H, W)
    # o_ref: VMEM f32[n_tile, H*W]
    x = x_ref[...]                      # (n_tile, H*W)
    HW = H * W

    a0 = a_ref[0]
    a1 = a_ref[1]
    a2 = a_ref[2]

    # Edge masks at (1, HW) only -- iota / mod / compares touch a couple of
    # vregs instead of the full block; jnp.where broadcasts them across the
    # image-batch (sublane) axis.
    idx = jax.lax.broadcasted_iota(jnp.int32, (1, HW), 1)
    col = idx % W                       # tiny shape, so the mod cost is negligible
    is_col0 = col == 0
    is_colW = col == W - 1
    is_row0 = idx < W
    is_rowH = idx >= HW - W

    # Neighbours via cyclic lane rotation (XLU); the wrapped-around lanes are
    # exactly the ones replaced by the centre value at the edges, which is what
    # replicate padding requires.
    left  = jnp.where(is_col0, x, pltpu.roll(x, shift=1,      axis=1))
    right = jnp.where(is_colW, x, pltpu.roll(x, shift=HW - 1, axis=1))
    up    = jnp.where(is_row0, x, pltpu.roll(x, shift=W,      axis=1))
    down  = jnp.where(is_rowH, x, pltpu.roll(x, shift=HW - W, axis=1))

    stencil = a0 * x + a1 * (left + right) + a2 * (up + down)

    # polynomial(x) = sum_{i=0..k} w[i] * (x - const)^i, Horner form.
    d = x if const == 0.0 else x - const     # static skip when const == 0
    poly = w_ref[poly_order]
    for i in range(poly_order - 1, -1, -1):
        poly = poly * d + w_ref[i]

    o_ref[...] = (stencil + poly).astype(o_ref.dtype)


def fcnn_forward(x, a, w, const=0.0):
    """x: (N, 1, H, W) float32; a: (3,); w: (poly_order+1,)."""
    N, C, H, W = x.shape
    assert C == 1, "FCNN conv filter has a single input channel"
    poly_order = w.shape[0] - 1
    HW = H * W
    itemsize = jnp.dtype(x.dtype).itemsize
    bytes_per_image = HW * itemsize

    # Free layout-preserving reshape; no padding copies anywhere.
    x_flat = x.reshape(N, HW)

    # Per-generation block-size / scoped-VMEM budget.
    try:
        info = pltpu.get_tpu_info()
        vmem_cap = getattr(info, "vmem_capacity_bytes", None) or 64 * 1024 * 1024
    except Exception:
        vmem_cap = 64 * 1024 * 1024       # conservative (v7x-sized) fallback
    if vmem_cap >= 96 * 1024 * 1024:      # v5e / v6e: 128 MiB VMEM
        target_block_bytes = 4 * 1024 * 1024
        vmem_limit = 48 * 1024 * 1024
    else:                                 # v7x: 64 MiB VMEM per TensorCore
        target_block_bytes = 2 * 1024 * 1024
        vmem_limit = 32 * 1024 * 1024

    SUB = 8
    if N <= SUB:
        # Single tiny block; block sublane dim equals the full batch axis.
        n_tile = N
    else:
        n_target = max(SUB, target_block_bytes // bytes_per_image)
        n_half = -(-N // 2)               # >= 2 grid steps so both v7x TCs work
        n_tile = min(n_target, n_half, N)
        n_tile = max(SUB, (n_tile // SUB) * SUB)   # sublane-aligned
    grid = (pl.cdiv(N, n_tile),)
    # No jnp.pad / out[:N]: a ragged last block is masked by Pallas, and the
    # computation is purely per-row so garbage rows never reach HBM.

    # TODO(synk): for image sizes where H*W is not a multiple of 128, the tail
    # vreg stores are partially masked; lane-padding the flattened axis (and
    # folding the pad lanes into the edge masks) would make them dense.
    # 16x16 (HW=256) is already lane-dense.
    # TODO(synk): very large single images (H*W*4 approaching the VMEM budget)
    # would need an H-tiling grid axis with in-kernel halo handling.

    kernel = functools.partial(_fcnn_kernel, const=float(const),
                               poly_order=poly_order, H=H, W=W)

    cost = pl.CostEstimate(
        flops=N * HW * (9 + 2 * poly_order),
        transcendentals=0,
        bytes_accessed=2 * N * HW * itemsize,
    )

    out = pl.pallas_call(
        kernel,
        out_shape=jax.ShapeDtypeStruct((N, HW), x.dtype),
        grid_spec=pltpu.PrefetchScalarGridSpec(
            num_scalar_prefetch=0,
            grid=grid,
            in_specs=[
                pl.BlockSpec(memory_space=pltpu.MemorySpace.SMEM),   # a
                pl.BlockSpec(memory_space=pltpu.MemorySpace.SMEM),   # w
                pl.BlockSpec((n_tile, HW), lambda n: (n, 0)),        # images
            ],
            out_specs=pl.BlockSpec((n_tile, HW), lambda n: (n, 0)),
        ),
        compiler_params=pltpu.CompilerParams(
            dimension_semantics=("parallel",),
            vmem_limit_bytes=int(vmem_limit),
        ),
        cost_estimate=cost,
    )(a, w, x_flat)

    return out.reshape(N, C, H, W)


def _reference(x, a, w, const=0.0):
    """Pure-JAX reference mirroring the PyTorch forward."""
    N, C, H, W = x.shape
    xp = jnp.pad(x, ((0, 0), (0, 0), (1, 1), (1, 1)), mode="edge")
    stencil = (a[0] * xp[:, :, 1:H + 1, 1:W + 1]
               + a[1] * (xp[:, :, 1:H + 1, 0:W] + xp[:, :, 1:H + 1, 2:W + 2])
               + a[2] * (xp[:, :, 0:H, 1:W + 1] + xp[:, :, 2:H + 2, 1:W + 1]))
    d = x - const
    poly = w[0] * jnp.ones_like(x)
    term = jnp.ones_like(x)
    for i in range(1, w.shape[0]):
        term = term * d
        poly = poly + w[i] * term
    return stencil + poly


if __name__ == "__main__":
    key = jax.random.PRNGKey(0)
    k1, k2, k3, k4 = jax.random.split(key, 4)

    # Case 1: module defaults (poly_order=3, const=0, all-ones parameters).
    a1 = jnp.ones((3,), dtype=jnp.float32)
    w1 = jnp.ones((4,), dtype=jnp.float32)
    x1 = jax.random.normal(k1, (2, 1, 16, 16), dtype=jnp.float32)
    out1 = jax.block_until_ready(fcnn_forward(x1, a1, w1, const=0.0))
    ref1 = _reference(x1, a1, w1, const=0.0)
    assert out1.shape == x1.shape
    assert jnp.allclose(out1, ref1, atol=1e-5, rtol=1e-5), "case 1 mismatch"

    # Case 2: ragged multi-block grid (N=20 -> blocks of 8) with const != 0
    # and poly_order=2, exercising the cdiv edge-block path.
    a2 = jax.random.normal(k2, (3,), dtype=jnp.float32)
    w2 = jax.random.normal(k3, (3,), dtype=jnp.float32)
    x2 = jax.random.normal(k4, (20, 1, 16, 16), dtype=jnp.float32)
    out2 = jax.block_until_ready(fcnn_forward(x2, a2, w2, const=0.5))
    ref2 = _reference(x2, a2, w2, const=0.5)
    assert out2.shape == x2.shape
    assert jnp.allclose(out2, ref2, atol=1e-5, rtol=1e-5), "case 2 mismatch"

    print("KERNEL_OK")
</pallas_src>

<mosaic_0001>
module attributes {stable_mosaic.version = 11 : i64} {
  func.func @_fcnn_kernel(%arg0: i32, %arg1: memref<3xf32, #tpu.memory_space<smem>>, %arg2: memref<4xf32, #tpu.memory_space<smem>>, %arg3: memref<2x256xf32, #tpu.memory_space<vmem>>, %arg4: memref<2x256xf32, #tpu.memory_space<vmem>>) attributes {dimension_semantics = [#tpu.dimension_semantics<parallel>], iteration_bounds = array<i64: 1>, scalar_prefetch = 0 : i64, scratch_operands = 0 : i64, tpu.core_type = #tpu.core_type<tc>, window_params = [{transform_indices = @transform_0, window_bounds = array<i64: 3>}, {transform_indices = @transform_1, window_bounds = array<i64: 4>}, {transform_indices = @transform_2, window_bounds = array<i64: 2, 256>}, {transform_indices = @transform_3, window_bounds = array<i64: 2, 256>}]} {
    %c0 = arith.constant 0 : index
    %c0_0 = arith.constant 0 : index
    %0 = vector.load %arg3[%c0, %c0_0] : memref<2x256xf32, #tpu.memory_space<vmem>>, vector<2x256xf32>
    %c0_1 = arith.constant 0 : index
    %1 = memref.load %arg1[%c0_1] : memref<3xf32, #tpu.memory_space<smem>>
    %c1 = arith.constant 1 : index
    %2 = memref.load %arg1[%c1] : memref<3xf32, #tpu.memory_space<smem>>
    %c2 = arith.constant 2 : index
    %3 = memref.load %arg1[%c2] : memref<3xf32, #tpu.memory_space<smem>>
    %4 = tpu.iota {dimensions = array<i32: 1>} : vector<1x256xi32>
    %c16_i32 = arith.constant 16 : i32
    %c0_i32 = arith.constant 0 : i32
    %5 = arith.cmpi eq, %c16_i32, %c0_i32 : i32
    %c1_i32 = arith.constant 1 : i32
    %6 = arith.select %5, %c1_i32, %c16_i32 : i32
    %7 = vector.broadcast %6 : i32 to vector<1x256xi32>
    %8 = arith.remsi %4, %7 : vector<1x256xi32>
    %c0_i32_2 = arith.constant 0 : i32
    %9 = vector.broadcast %c0_i32_2 : i32 to vector<1x256xi32>
    %10 = arith.cmpi ne, %8, %9 : vector<1x256xi32>
    %c0_i32_3 = arith.constant 0 : i32
    %11 = vector.broadcast %c0_i32_3 : i32 to vector<1x256xi32>
    %12 = arith.cmpi slt, %8, %11 : vector<1x256xi32>
    %c0_i32_4 = arith.constant 0 : i32
    %13 = arith.cmpi slt, %6, %c0_i32_4 : i32
    %14 = vector.broadcast %13 : i1 to vector<1x256xi1>
    %15 = vector.broadcast %14 : vector<1x256xi1> to vector<1x256xi1>
    %16 = arith.xori %12, %15 : vector<1x256xi1>
    %17 = arith.andi %16, %10 : vector<1x256xi1>
    %18 = vector.broadcast %6 : i32 to vector<1x256xi32>
    %19 = arith.addi %8, %18 : vector<1x256xi32>
    %20 = arith.select %17, %19, %8 : vector<1x256xi1>, vector<1x256xi32>
    %c0_i32_5 = arith.constant 0 : i32
    %21 = vector.broadcast %c0_i32_5 : i32 to vector<1x256xi32>
    %22 = arith.cmpi eq, %20, %21 : vector<1x256xi32>
    %c15_i32 = arith.constant 15 : i32
    %23 = vector.broadcast %c15_i32 : i32 to vector<1x256xi32>
    %24 = arith.cmpi eq, %20, %23 : vector<1x256xi32>
    %c16_i32_6 = arith.constant 16 : i32
    %25 = vector.broadcast %c16_i32_6 : i32 to vector<1x256xi32>
    %26 = arith.cmpi slt, %4, %25 : vector<1x256xi32>
    %c240_i32 = arith.constant 240 : i32
    %27 = vector.broadcast %c240_i32 : i32 to vector<1x256xi32>
    %28 = arith.cmpi sge, %4, %27 : vector<1x256xi32>
    %c1_i32_7 = arith.constant 1 : i32
    %29 = tpu.dynamic_rotate %0 by %c1_i32_7 dim 1 : vector<2x256xf32>, i32 -> vector<2x256xf32>
    %30 = vector.shape_cast %22 : vector<1x256xi1> to vector<1x256xi1>
    %31 = vector.broadcast %30 : vector<1x256xi1> to vector<2x256xi1>
    %32 = arith.select %31, %0, %29 : vector<2x256xi1>, vector<2x256xf32>
    %c255_i32 = arith.constant 255 : i32
    %33 = tpu.dynamic_rotate %0 by %c255_i32 dim 1 : vector<2x256xf32>, i32 -> vector<2x256xf32>
    %34 = vector.shape_cast %24 : vector<1x256xi1> to vector<1x256xi1>
    %35 = vector.broadcast %34 : vector<1x256xi1> to vector<2x256xi1>
    %36 = arith.select %35, %0, %33 : vector<2x256xi1>, vector<2x256xf32>
    %c16_i32_8 = arith.constant 16 : i32
    %37 = tpu.dynamic_rotate %0 by %c16_i32_8 dim 1 : vector<2x256xf32>, i32 -> vector<2x256xf32>
    %38 = vector.shape_cast %26 : vector<1x256xi1> to vector<1x256xi1>
    %39 = vector.broadcast %38 : vector<1x256xi1> to vector<2x256xi1>
    %40 = arith.select %39, %0, %37 : vector<2x256xi1>, vector<2x256xf32>
    %c240_i32_9 = arith.constant 240 : i32
    %41 = tpu.dynamic_rotate %0 by %c240_i32_9 dim 1 : vector<2x256xf32>, i32 -> vector<2x256xf32>
    %42 = vector.shape_cast %28 : vector<1x256xi1> to vector<1x256xi1>
    %43 = vector.broadcast %42 : vector<1x256xi1> to vector<2x256xi1>
    %44 = arith.select %43, %0, %41 : vector<2x256xi1>, vector<2x256xf32>
    %45 = vector.broadcast %1 : f32 to vector<2x256xf32>
    %46 = arith.mulf %45, %0 : vector<2x256xf32>
    %47 = arith.addf %32, %36 : vector<2x256xf32>
    %48 = vector.broadcast %2 : f32 to vector<2x256xf32>
    %49 = arith.mulf %48, %47 : vector<2x256xf32>
    %50 = arith.addf %46, %49 : vector<2x256xf32>
    %51 = arith.addf %40, %44 : vector<2x256xf32>
    %52 = vector.broadcast %3 : f32 to vector<2x256xf32>
    %53 = arith.mulf %52, %51 : vector<2x256xf32>
    %54 = arith.addf %50, %53 : vector<2x256xf32>
    %c3 = arith.constant 3 : index
    %55 = memref.load %arg2[%c3] : memref<4xf32, #tpu.memory_space<smem>>
    %56 = vector.broadcast %55 : f32 to vector<2x256xf32>
    %57 = arith.mulf %56, %0 : vector<2x256xf32>
    %c2_10 = arith.constant 2 : index
    %58 = memref.load %arg2[%c2_10] : memref<4xf32, #tpu.memory_space<smem>>
    %59 = vector.broadcast %58 : f32 to vector<2x256xf32>
    %60 = arith.addf %57, %59 : vector<2x256xf32>
    %61 = arith.mulf %60, %0 : vector<2x256xf32>
    %c1_11 = arith.constant 1 : index
    %62 = memref.load %arg2[%c1_11] : memref<4xf32, #tpu.memory_space<smem>>
    %63 = vector.broadcast %62 : f32 to vector<2x256xf32>
    %64 = arith.addf %61, %63 : vector<2x256xf32>
    %65 = arith.mulf %64, %0 : vector<2x256xf32>
    %c0_12 = arith.constant 0 : index
    %66 = memref.load %arg2[%c0_12] : memref<4xf32, #tpu.memory_space<smem>>
    %67 = vector.broadcast %66 : f32 to vector<2x256xf32>
    %68 = arith.addf %65, %67 : vector<2x256xf32>
    %69 = arith.addf %54, %68 : vector<2x256xf32>
    %c0_13 = arith.constant 0 : index
    %c0_14 = arith.constant 0 : index
    %70 = vector.load %arg4[%c0_13, %c0_14] : memref<2x256xf32, #tpu.memory_space<vmem>>, vector<2x256xf32>
    tpu.vector_store %arg4[%c0_13, %c0_14], %69 {strides = array<i32>} : memref<2x256xf32, #tpu.memory_space<vmem>>, vector<2x256xf32>,
    return
  }
  func.func @transform_0(%arg0: i32) -> i32 {
    %c0_i32 = arith.constant 0 : i32
    %c0_i32_0 = arith.constant 0 : i32
    return %c0_i32 : i32
  }
  func.func @transform_1(%arg0: i32) -> i32 {
    %c0_i32 = arith.constant 0 : i32
    %c0_i32_0 = arith.constant 0 : i32
    return %c0_i32 : i32
  }
  func.func @transform_2(%arg0: i32) -> (i32, i32) {
    %c0_i32 = arith.constant 0 : i32
    %c0_i32_0 = arith.constant 0 : i32
    return %arg0, %c0_i32 : i32, i32
  }
  func.func @transform_3(%arg0: i32) -> (i32, i32) {
    %c0_i32 = arith.constant 0 : i32
    %c0_i32_0 = arith.constant 0 : i32
    return %arg0, %c0_i32 : i32, i32
  }
}

</mosaic_0001>

<bundles_post_ra>
// kernel: tpu_custom_call.1
= control target key start
LH: loop header
LB: loop body
LE: loop exit
PB: predicated region body
PF: predicated region fallthrough
CT: control target
= control target key end

     0   :  { %8 = vsyncpa [#allocation4], 0  ;;  %s390_s0 = inlined_call_operand.hbm [shape: f32[3], index: 0, kind: input, shape index: {}]   ;;  %s391_s1 = inlined_call_operand.vmem [shape: f32[4], index: 1, kind: input, shape index: {}]   ;;  %s392_s2 = inlined_call_operand.vmem [shape: f32[2,256], index: 2, kind: input, shape index: {}]   ;;  %s393_s3 = inlined_call_operand.hbm [shape: f32[2,256], index: 3, kind: output, shape index: {}]  }
   0x1   :  { %9 = vsyncpa [#allocation5], 0 }
   0x2   :  { %10 = vsyncpa [#allocation3], 0  ;;  %s25_s14 = sshll.u32 %s391_s1, 4  ;;  %s220_s17 = scalar_lea.hbm %s390_s0, 16  ;;  %s26_s14 = int_to_ptr.vmem [resolvable:$true] %s25_s14 }
   0x3   :  { %p221_p0 = scmp.ne.s32.totalorder %s390_s0, %s220_s17  ;;  %p224_p1 = scmp.lt.u32.totalorder %s220_s17, %s390_s0 }
   0x5   :  { %p226_p2 = pnand %p224_p1, %p221_p0 }
   0x7   :  { %229 = shalt.err (!%p226_p2)
}
   0x8   :  { %s270_s22 = smov [#allocation2]   ;;  %s230_s1 = scalar_lea.vmem %s26_s14, 16 }
   0x9   :  { %18 = dma.hbm_to_smem %s390_s0, 16, %s270_s22, [#allocation4]  }
   0xa   :  { %p231_p3 = scmp.ne.s32.totalorder %s26_s14, %s230_s1  ;;  %p235_p4 = scmp.lt.s32.totalorder %s26_s14, %s26_s14 }
   0xb   :  { %p236_p5 = scmp.lt.s32.totalorder %s230_s1, %s230_s1 }
   0xd   :  { %p237_p6 = por %p236_p5, %p235_p4 }
   0xf   :  { %p238_p7 = pnand %p237_p6, %p231_p3 }
  0x11   :  { %241 = shalt.err (!%p238_p7)
}
  0x12   :  { %s271_s25 = smov [#allocation6]  }
  0x13   :  { %28 = dma.vmem_to_smem %s26_s14, 16, %s271_s25, [#allocation5]  }
  0x14   :  { %264 = dma.done.wait [#allocation4], 16  }
  0x15   :  { %265 = vsyncadd [#allocation4], 4294967280 }
  0x16   :  { %266 = dma.done.wait [#allocation5], 16  }
  0x17   :  { %267 = vsyncadd [#allocation5], 4294967280 }
  0x18   :  { %37 = sfence }
  0x19   :  { %v42_v0 = vlaneseq  ;;  %v272_v1 = vmov 1983009808   ;;  %v316_v5 = vld [vmem:[%s392_s2] sm:$0xf]  ;;  %s273_s27 = smov 127   ;;  %s274_s28 = smov 1  }
  0x1a   :  { %v79_v2 = vunpack.c.l.s4 %v272_v1  ;;  %s275_s29 = smov 16   ;;  %s276_s2 = smov 112  }
  0x1b   :  { %v82_v3 = vshrl.u32 %v42_v0, 7  ;;  %s209_s30 = sld [smem:[#allocation6 + $0x3]]  ;;  %s210_s4 = sld [smem:[#allocation6 + $0x2]]  ;;  %v43_v9 = vand.u32 127, %v42_v0 }
  0x1c   :  { %v80_v4 = vunpack.c.0.s8 %v79_v2  ;;  %s328_s5 = sld [smem:[#allocation2 + $0x1]]  ;;  %s333_s7 = sld [smem:[#allocation2 + $0x2]] }
  0x1d   :  { %v44_v11 = vadd.s32 128, %v43_v9  ;;  %s331_s6 = sld [smem:[#allocation6 + $0x1]]  ;;  %v49_v16 = vand.u32 15, %v43_v9  ;;  %vm105_vm0 = vcmp.lt.s32.totalorder %v43_v9, 127  ;;  %s335_s8 = sld [smem:[#allocation2]]  ;;  %vm73_vm2 = vcmp.lt.s32.totalorder %v43_v9, 16 }
  0x1e   :  { %v318_v6 = vsub.s32 %v80_v4, %v82_v3  ;;  %vm92_vm4 = vcmp.lt.s32.totalorder %v43_v9, 1  ;;  %vm130_vm7 = vcmp.lt.s32.totalorder %v43_v9, 112  ;;  %s186_s9 = sld [smem:[#allocation6]]  ;;  %s277_s10 = smov [#allocation7]  }
  0x1f   :  { %v56_v17 = vand.u32 15, %v44_v11  ;;  %vm337_vm1 = vcmp.eq.s32.totalorder %v49_v16, 15  ;;  %vm341_vm3 = vcmp.eq.s32.totalorder %v49_v16, 0  ;;  %vm76_vm8 = vcmp.ge.s32.totalorder %v44_v11, 240  ;;  %s197_s11 = sshll.u32 %s277_s10, 4  ;;  %s198_s11 = int_to_ptr.vmem [resolvable:$true] %s197_s11 }
  0x20   :  { %v84_v7 = vrot.slane %v316_v5, %v318_v6  ;;  %s242_s12 = scalar_lea.vmem %s198_s11, 64  ;;  %p247_p9 = scmp.lt.s32.totalorder %s198_s11, %s198_s11 }
  0x21   :  { %v176_v10 = vstv %s209_s30  ;;  %v179_v15 = vstv %s210_s4  ;;  %vm345_vm5 = vcmp.eq.s32.totalorder %v56_v17, 15  ;;  %vm349_vm6 = vcmp.eq.s32.totalorder %v56_v17, 0  ;;  %p243_p8 = scmp.ne.s32.totalorder %s198_s11, %s242_s12  ;;  %p248_p10 = scmp.lt.s32.totalorder %s242_s12, %s242_s12 }
  0x22   :  { %101 = vrot.lane.b32.xlu1 %v84_v7, %s273_s27  ;;  %88 = vrot.lane.b32.xlu0 %v84_v7, %s274_s28  ;;  %v322_v8 = vcombine.high %v84_v7, %v84_v7  ;;  %v177_v14 = vmul.f32 %v176_v10, %v316_v5  ;;  %v143_v28 = vstv %s328_s5  ;;  %v160_v43 = vstv %s333_s7 }
  0x23   :  { %v183_v34 = vstv %s331_s6  ;;  %v139_v45 = vstv %s335_s8  ;;  %p249_p11 = por %p248_p10, %p247_p9 }
  0x24   :  { %v180_v20 = vadd.f32 %v179_v15, %v177_v14  ;;  %v140_v55 = vmul.f32 %v139_v45, %v316_v5  ;;  %v187_v61 = vstv %s186_s9 }
  0x25   :  { %p250_p12 = pnand %p249_p11, %p243_p8 }
  0x26   :  { %114 = vrot.lane.b32.xlu0 %v84_v7, %s275_s29  ;;  %103 = vrot.lane.b32.xlu1 %v322_v8, %s273_s27  ;;  %v181_v30 = vmul.f32 %v180_v20, %v316_v5 }
  0x28   :  { %v184_v46 = vadd.f32 %v183_v34, %v181_v30 }
  0x2a   :  { %116 = vrot.lane.b32.xlu1 %v322_v8, %s275_s29  ;;  %90 = vrot.lane.b32.xlu0 %v322_v8, %s274_s28  ;;  %v185_v60 = vmul.f32 %v184_v46, %v316_v5 }
  0x2c   :  { %v188_v1 = vadd.f32 %v187_v61, %v185_v60 }
  0x2e   :  { %128 = vrot.lane.b32.xlu1 %v322_v8, %s276_s2  ;;  %126 = vrot.lane.b32.xlu0 %v84_v7, %s276_s2 }
  0x94   :  { %v102_v12 = vpop.permute.xlu1 %101  ;;  %v89_v13 = vpop.permute.xlu0 %88 }
  0x98   :  { %v115_v18 = vpop.permute.xlu0 %114  ;;  %v104_v19 = vpop.permute.xlu1 %103 }
  0x99   :  { %v106_v24 = vsel %vm105_vm0, %v102_v12, %v104_v19  ;;  %v107_v25 = vsel %vm105_vm0, %v104_v19, %v102_v12 }
  0x9a   :  { %v112_v35 = vsel %vm337_vm1, %v84_v7, %v106_v24  ;;  %v113_v36 = vsel %vm345_vm5, %v322_v8, %v107_v25 }
  0x9c   :  { %v117_v27 = vpop.permute.xlu1 %116  ;;  %v91_v29 = vpop.permute.xlu0 %90 }
  0x9d   :  { %v119_v31 = vsel %vm73_vm2, %v117_v27, %v115_v18  ;;  %v93_v32 = vsel %vm92_vm4, %v89_v13, %v91_v29  ;;  %v94_v33 = vsel %vm92_vm4, %v91_v29, %v89_v13  ;;  %v118_v51 = vsel %vm73_vm2, %v115_v18, %v117_v27 }
  0x9e   :  { %v99_v37 = vsel %vm341_vm3, %v84_v7, %v94_v33  ;;  %v100_v38 = vsel %vm349_vm6, %v322_v8, %v93_v32  ;;  %v124_v42 = vsel %vm73_vm2, %v84_v7, %v119_v31 }
  0x9f   :  { %v141_v39 = vadd.f32 %v112_v35, %v99_v37  ;;  %v142_v40 = vadd.f32 %v113_v36, %v100_v38 }
  0xa0   :  { %v129_v41 = vpop.permute.xlu1 %128  ;;  %v127_v44 = vpop.permute.xlu0 %126 }
  0xa1   :  { %v144_v47 = vmul.f32 %v143_v28, %v141_v39  ;;  %v145_v48 = vmul.f32 %v143_v28, %v142_v40  ;;  %v131_v49 = vsel %vm130_vm7, %v127_v44, %v129_v41  ;;  %v132_v50 = vsel %vm130_vm7, %v129_v41, %v127_v44 }
  0xa2   :  { %v138_v52 = vsel %vm76_vm8, %v322_v8, %v132_v50  ;;  %v158_v53 = vadd.f32 %v131_v49, %v124_v42 }
  0xa3   :  { %v159_v54 = vadd.f32 %v138_v52, %v118_v51  ;;  %v148_v56 = vcombine.low %v144_v47, %v145_v48 }
  0xa4   :  { %v161_v57 = vmul.f32 %v160_v43, %v158_v53 }
  0xa5   :  { %v162_v58 = vmul.f32 %v160_v43, %v159_v54  ;;  %v155_v59 = vrot.slane %v148_v56, %v318_v6 }
  0xa7   :  { %v165_v62 = vcombine.low %v161_v57, %v162_v58  ;;  %v157_v63 = vadd.f32 %v155_v59, %v140_v55 }
  0xa9   :  { %v172_v0 = vrot.slane %v165_v62, %v318_v6 }
  0xab   :  { %v174_v2 = vadd.f32 %v172_v0, %v157_v63 }
  0xad   :  { %v189_v3 = vadd.f32 %v188_v1, %v174_v2 }
  0xaf   :  { %190 = vst [vmem:[#allocation7] sm:$0xf] %v189_v3 }
  0xb0   :  { %253 = shalt.err (!%p250_p12)
}
  0xb1   :  { %s254_s15 = scalar_lea.hbm %s393_s3, 64 }
  0xb2   :  { %p255_p13 = scmp.ne.s32.totalorder %s393_s3, %s254_s15  ;;  %p258_p0 = scmp.lt.u32.totalorder %s254_s15, %s393_s3 }
  0xb4   :  { %p260_p1 = pnand %p258_p0, %p255_p13 }
  0xb6   :  { %263 = shalt.err (!%p260_p1)
}
  0xb7   :  { %200 = dma.vmem_to_hbm [thread:$0]  %s198_s11, 64, %s393_s3, [#allocation3]  }
  0xb8   :  { %268 = dma.done.wait [#allocation3], 64  }
  0xb9   :  { %269 = vsyncadd [#allocation3], 4294967232 }
  0xba   :  { %204 = vsyncpa [#allocation3], 1 }
  0xbb   :  { %205 = vsyncpa [#allocation4], 1 }
  0xbc   :  { %206 = vsyncpa [#allocation5], 1 }

</bundles_post_ra>
